<compile_context>
chip_gen: v7x
topology: tpu7x:2x2x1
jax: 0.10.0
libtpu: 0.0.40
codegen_flags: <defaults>
</compile_context>

<pallas_src>
import functools

import jax
import jax.numpy as jnp
from jax.experimental import pallas as pl
from jax.experimental.pallas import tpu as pltpu


# --------------------------------------------------------------------------- #
# Kernels
# --------------------------------------------------------------------------- #
def _linear_bn_relu_kernel(x_ref, w_ref, p_ref, o_ref, *, eps, inv_n, matmul_dtype):
    # x_ref: (N, C_in)        input dtype; cast to matmul dtype on the VPU (no HBM copy)
    # w_ref: (C_in, tile_c)   matmul dtype, pre-laid-out -> ((1,),(0,)) contraction
    # p_ref: (2, tile_c) f32  row 0 = gamma, row 1 = beta
    # o_ref: (N, tile_c)
    x = x_ref[...].astype(matmul_dtype)
    y = jnp.dot(x, w_ref[...], preferred_element_type=jnp.float32)  # (N, tile_c) f32

    # Training-mode BatchNorm1d over the batch axis (biased variance), shifted two-pass:
    # (y - mean) is reused for both the variance and the normalize step.
    mean = jnp.sum(y, axis=0, keepdims=True) * inv_n
    d = y - mean
    var = jnp.sum(d * d, axis=0, keepdims=True) * inv_n
    inv_std = jax.lax.rsqrt(var + eps)

    gamma = p_ref[0:1, :]
    beta = p_ref[1:2, :]
    o_ref[...] = jnp.maximum(d * (gamma * inv_std) + beta, 0.0).astype(o_ref.dtype)


def _fused_mlp_kernel(x_ref, *refs, eps, inv_n, num_layers, matmul_dtype):
    # refs = (w0, p0, w1, p1, ..., o_ref); everything is a full VMEM-resident block.
    *param_refs, o_ref = refs
    h = x_ref[...].astype(matmul_dtype)
    for layer in range(num_layers):
        w_ref = param_refs[2 * layer]
        p_ref = param_refs[2 * layer + 1]
        y = jnp.dot(h, w_ref[...], preferred_element_type=jnp.float32)
        mean = jnp.sum(y, axis=0, keepdims=True) * inv_n
        d = y - mean
        var = jnp.sum(d * d, axis=0, keepdims=True) * inv_n
        inv_std = jax.lax.rsqrt(var + eps)
        a = jnp.maximum(d * (p_ref[0:1, :] * inv_std) + p_ref[1:2, :], 0.0)
        h = a.astype(matmul_dtype) if layer + 1 < num_layers else a
    o_ref[...] = h.astype(o_ref.dtype)


# --------------------------------------------------------------------------- #
# Host-side helpers
# --------------------------------------------------------------------------- #
def _vmem_limit_bytes():
    """Per-generation scoped-VMEM budget (None -> keep the compiler default)."""
    try:
        kind = jax.devices()[0].device_kind.lower()
    except Exception:  # pragma: no cover
        kind = ""
    if "v4" in kind or "v5" in kind or "v6" in kind:
        return 100 * 1024 * 1024        # 128 MiB physical VMEM parts
    if "7" in kind:
        return 48 * 1024 * 1024         # v7x: 64 MiB physical VMEM
    return None                          # unknown part: do not override the default


def _pick_tile_cout(c_out, n, c_in, vmem_limit, matmul_itemsize):
    """Largest multiple-of-128 divisor of C_out that fits the VMEM budget; split once
    more (when possible) so the grid has >= 2 steps for v7x megacore sharding."""
    if c_out % 128 != 0:
        # TODO(synk): pad C_out to a multiple of 128 in prepare() and slice the output
        # to keep v5e stores lane-dense; full-array block (masked stores) for now.
        return c_out

    budget = int((vmem_limit if vmem_limit else 32 * 1024 * 1024) * 0.6)
    x_bytes = n * c_in * 4  # resident x block, single-buffered

    def tile_bytes(t):
        w = 2 * c_in * t * matmul_itemsize   # double-buffered weight tile
        o = 2 * n * t * 4                    # double-buffered output tile
        live = 2 * n * t * 4                 # f32 y + epilogue temporaries
        p = 2 * 2 * t * 4                    # packed gamma/beta tile (double-buffered)
        return w + o + live + p

    divisors = [d for d in range(128, c_out + 1, 128) if c_out % d == 0]
    fitting = [d for d in divisors if x_bytes + tile_bytes(d) <= budget]
    tile = max(fitting) if fitting else 128

    # Prefer >= 2 grid steps so both TensorCores on v7x get work (no-op on v5e/v6e).
    if tile == c_out and c_out >= 256 and (c_out // 2) % 128 == 0:
        tile = c_out // 2
    return tile


def prepare_linear_bn_relu_params(weight, gamma, beta, *, matmul_dtype=jnp.bfloat16):
    """One-time parameter layout (cache the result across calls):
       weight (C_out, C_in) -> (C_in, C_out) in the matmul dtype,
       gamma/beta packed into a single (2, C_out) f32 array (one DMA)."""
    w_t = jnp.asarray(weight).T.astype(matmul_dtype)                     # (C_in, C_out)
    params = jnp.stack([jnp.asarray(gamma), jnp.asarray(beta)]).astype(jnp.float32)
    return w_t, params


# --------------------------------------------------------------------------- #
# Public wrappers
# --------------------------------------------------------------------------- #
def linear_bn_relu(x, weight=None, gamma=None, beta=None, bias=None, *, eps=1e-5,
                   matmul_dtype=jnp.bfloat16, out_dtype=None, prepared=None):
    """LinearBnRelu forward (single layer).

    x:        (N, C_in)
    weight:   (C_out, C_in)  PyTorch nn.Linear layout (ignored if `prepared` is given)
    gamma/beta: BatchNorm1d affine parameters (ignored if `prepared` is given)
    bias:     accepted for API parity but ignored: training-mode BN subtracts the
              per-channel batch mean, which cancels any per-channel bias exactly.
    prepared: output of prepare_linear_bn_relu_params() -- pass this to avoid per-call
              parameter transpose/cast work.
    """
    del bias  # mathematically a no-op under training-mode BatchNorm
    x = jnp.asarray(x)
    n, c_in = x.shape
    if prepared is None:
        prepared = prepare_linear_bn_relu_params(weight, gamma, beta,
                                                 matmul_dtype=matmul_dtype)
    w_t, params = prepared
    c_in_w, c_out = w_t.shape
    assert c_in == c_in_w, "weight must be (C_out, C_in) / prepared (C_in, C_out)"
    out_dtype = x.dtype if out_dtype is None else out_dtype
    # NOTE: PyTorch raises for N == 1 training-mode BatchNorm1d; not reproduced here.

    vmem_limit = _vmem_limit_bytes()
    tile_cout = _pick_tile_cout(c_out, n, c_in, vmem_limit,
                                jnp.dtype(w_t.dtype).itemsize)
    grid = (c_out // tile_cout,)

    kernel = functools.partial(_linear_bn_relu_kernel, eps=float(eps),
                               inv_n=1.0 / float(n), matmul_dtype=matmul_dtype)

    def build_and_call(single_buffer_x):
        if single_buffer_x:
            # x block index is constant across the grid -> never re-fetched; single
            # buffering frees VMEM for larger C_out tiles (most valuable on v7x).
            x_spec = pl.BlockSpec((n, c_in), lambda j: (0, 0),
                                  pipeline_mode=pl.Buffered(1))
        else:
            x_spec = pl.BlockSpec((n, c_in), lambda j: (0, 0))
        return pl.pallas_call(
            kernel,
            out_shape=jax.ShapeDtypeStruct((n, c_out), out_dtype),
            grid_spec=pltpu.PrefetchScalarGridSpec(
                num_scalar_prefetch=0,
                grid=grid,
                in_specs=[
                    x_spec,                                             # resident x
                    pl.BlockSpec((c_in, tile_cout), lambda j: (0, j)),  # weight tile
                    pl.BlockSpec((2, tile_cout), lambda j: (0, j)),     # gamma/beta
                ],
                out_specs=pl.BlockSpec((n, tile_cout), lambda j: (0, j)),
            ),
            compiler_params=pltpu.CompilerParams(
                dimension_semantics=("parallel",),   # independent C_out tiles
                vmem_limit_bytes=vmem_limit,
            ),
        )(x, w_t, params)

    try:
        return build_and_call(True)
    except Exception:
        # Conservative fallback if pl.Buffered(1) is rejected by this jax/Mosaic build.
        return build_and_call(False)


def fused_linear_bn_relu_mlp(x, prepared_layers, *, eps=1e-5,
                             matmul_dtype=jnp.bfloat16, out_dtype=None):
    """Several LinearBnRelu layers fused into ONE pallas_call: weights/params as
    inputs, intermediate activations kept in VMEM (no HBM round-trips between layers).
    `prepared_layers` is a list of prepare_linear_bn_relu_params() results."""
    x = jnp.asarray(x)
    n, c_in = x.shape
    out_dtype = x.dtype if out_dtype is None else out_dtype

    flat_args, in_specs = [], [pl.BlockSpec((n, c_in), lambda i: (0, 0))]
    cur = c_in
    for (w_t, params) in prepared_layers:
        ci, co = w_t.shape
        assert ci == cur, "layer input width mismatch"
        cur = co
        flat_args += [w_t, params]
        in_specs += [pl.BlockSpec((ci, co), lambda i: (0, 0)),
                     pl.BlockSpec((2, co), lambda i: (0, 0))]
    c_out = cur

    kernel = functools.partial(_fused_mlp_kernel, eps=float(eps), inv_n=1.0 / float(n),
                               num_layers=len(prepared_layers),
                               matmul_dtype=matmul_dtype)
    return pl.pallas_call(
        kernel,
        out_shape=jax.ShapeDtypeStruct((n, c_out), out_dtype),
        grid_spec=pltpu.PrefetchScalarGridSpec(
            num_scalar_prefetch=0,
            grid=(1,),
            in_specs=in_specs,
            out_specs=pl.BlockSpec((n, c_out), lambda i: (0, 0)),
        ),
        compiler_params=pltpu.CompilerParams(
            dimension_semantics=("arbitrary",),
            vmem_limit_bytes=_vmem_limit_bytes(),
        ),
    )(x, *flat_args)


# --------------------------------------------------------------------------- #
# Pure-JAX reference (matches PyTorch LinearBnRelu.forward, training-mode BN)
# --------------------------------------------------------------------------- #
def _reference(x, weight, bias, gamma, beta, eps=1e-5):
    y = x @ weight.T + bias
    mean = jnp.mean(y, axis=0, keepdims=True)
    var = jnp.mean((y - mean) ** 2, axis=0, keepdims=True)
    return jnp.maximum(gamma * (y - mean) / jnp.sqrt(var + eps) + beta, 0.0)


if __name__ == "__main__":
    key = jax.random.PRNGKey(0)
    k1, k2, k3, k4, k5, k6, k7 = jax.random.split(key, 7)

    # ---- Test 1: small shapes, f32 matmul path (tight tolerance) ----
    N, C_IN, C_OUT = 8, 32, 64
    bound = 1.0 / (C_IN ** 0.5)
    x = jax.random.normal(k1, (N, C_IN), dtype=jnp.float32)
    weight = jax.random.uniform(k2, (C_OUT, C_IN), jnp.float32, -bound, bound)
    bias = jax.random.uniform(k3, (C_OUT,), jnp.float32, -bound, bound)
    gamma = jnp.ones((C_OUT,), jnp.float32)
    beta = jnp.zeros((C_OUT,), jnp.float32)

    out = linear_bn_relu(x, weight, gamma, beta, bias, eps=1e-5,
                         matmul_dtype=jnp.float32)
    out = jax.block_until_ready(out)
    ref = _reference(x, weight, bias, gamma, beta, eps=1e-5)
    assert out.shape == (N, C_OUT)
    assert jnp.allclose(out, ref, atol=1e-4, rtol=1e-4), "f32 path mismatch"

    # ---- Test 2: lane-dense C_out (grid >= 2 steps), cached bf16 params ----
    N2, C_IN2, C_OUT2 = 16, 32, 256
    bound2 = 1.0 / (C_IN2 ** 0.5)
    x2 = jax.random.normal(k4, (N2, C_IN2), dtype=jnp.float32)
    weight2 = jax.random.uniform(k5, (C_OUT2, C_IN2), jnp.float32, -bound2, bound2)
    gamma2 = jax.random.uniform(k6, (C_OUT2,), jnp.float32, 0.5, 1.5)
    beta2 = jax.random.normal(k7, (C_OUT2,)) * 0.1
    bias2 = jnp.zeros((C_OUT2,), jnp.float32)

    prep2 = prepare_linear_bn_relu_params(weight2, gamma2, beta2)   # cached bf16 layout
    out2 = linear_bn_relu(x2, prepared=prep2, eps=1e-5)             # no per-call casts
    out2 = jax.block_until_ready(out2)
    ref2 = _reference(x2, weight2, bias2, gamma2, beta2, eps=1e-5)
    assert out2.shape == (N2, C_OUT2)
    assert jnp.allclose(out2, ref2, atol=5e-2, rtol=5e-2), "bf16 path mismatch"

    # ---- Test 3: fused 3-layer LinearBnRelu MLP in one pallas_call (f32) ----
    dims = [32, 64, 64, 128]
    x3 = jax.random.normal(k1, (8, dims[0]), dtype=jnp.float32)
    prepared_layers, torch_layers = [], []
    kk = key
    for ci, co in zip(dims[:-1], dims[1:]):
        kk, kw, kb, kg, kbt = jax.random.split(kk, 5)
        b = 1.0 / (ci ** 0.5)
        w_l = jax.random.uniform(kw, (co, ci), jnp.float32, -b, b)
        b_l = jax.random.uniform(kb, (co,), jnp.float32, -b, b)
        g_l = jax.random.uniform(kg, (co,), jnp.float32, 0.8, 1.2)
        bt_l = jax.random.normal(kbt, (co,)) * 0.05
        torch_layers.append((w_l, b_l, g_l, bt_l))
        prepared_layers.append(
            prepare_linear_bn_relu_params(w_l, g_l, bt_l, matmul_dtype=jnp.float32))

    out3 = fused_linear_bn_relu_mlp(x3, prepared_layers, eps=1e-5,
                                    matmul_dtype=jnp.float32)
    out3 = jax.block_until_ready(out3)
    ref3 = x3
    for (w_l, b_l, g_l, bt_l) in torch_layers:
        ref3 = _reference(ref3, w_l, b_l, g_l, bt_l, eps=1e-5)
    assert out3.shape == (8, dims[-1])
    assert jnp.allclose(out3, ref3, atol=1e-3, rtol=1e-3), "fused MLP mismatch"

    print("KERNEL_OK")
</pallas_src>

<mosaic_0001>
module attributes {stable_mosaic.version = 11 : i64} {
  func.func @_linear_bn_relu_kernel(%arg0: i32, %arg1: memref<8x32xf32, #tpu.memory_space<vmem>>, %arg2: memref<32x64xf32, #tpu.memory_space<vmem>>, %arg3: memref<2x64xf32, #tpu.memory_space<vmem>>, %arg4: memref<8x64xf32, #tpu.memory_space<vmem>>) attributes {dimension_semantics = [#tpu.dimension_semantics<parallel>], iteration_bounds = array<i64: 1>, scalar_prefetch = 0 : i64, scratch_operands = 0 : i64, tpu.core_type = #tpu.core_type<tc>, window_params = [{pipeline_mode = #tpu.pipeline_mode<synchronous>, transform_indices = @transform_0, window_bounds = array<i64: 8, 32>}, {transform_indices = @transform_1, window_bounds = array<i64: 32, 64>}, {transform_indices = @transform_2, window_bounds = array<i64: 2, 64>}, {transform_indices = @transform_3, window_bounds = array<i64: 8, 64>}]} {
    %c0 = arith.constant 0 : index
    %c0_0 = arith.constant 0 : index
    %0 = vector.load %arg1[%c0, %c0_0] : memref<8x32xf32, #tpu.memory_space<vmem>>, vector<8x32xf32>
    %c0_1 = arith.constant 0 : index
    %c0_2 = arith.constant 0 : index
    %1 = vector.load %arg2[%c0_1, %c0_2] : memref<32x64xf32, #tpu.memory_space<vmem>>, vector<32x64xf32>
    %cst = arith.constant dense<0.000000e+00> : vector<8x64xf32>
    %2 = tpu.matmul %0, %1, %cst {dimension_numbers = #tpu.dot_dimension_numbers<[1], [0], [0], [1], [0, 0, 1, 1], [], []>} : vector<8x32xf32>, vector<32x64xf32>, vector<8x64xf32> -> vector<8x64xf32>
    %cst_3 = arith.constant dense<0.000000e+00> : vector<64xf32>
    %3 = vector.multi_reduction <add>, %2, %cst_3 [0] : vector<8x64xf32> to vector<64xf32>
    %4 = vector.shape_cast %3 : vector<64xf32> to vector<1x64xf32>
    %cst_4 = arith.constant 1.250000e-01 : f32
    %5 = vector.broadcast %cst_4 : f32 to vector<1x64xf32>
    %6 = arith.mulf %4, %5 : vector<1x64xf32>
    %7 = vector.broadcast %6 : vector<1x64xf32> to vector<8x64xf32>
    %8 = arith.subf %2, %7 : vector<8x64xf32>
    %9 = arith.mulf %8, %8 : vector<8x64xf32>
    %cst_5 = arith.constant dense<0.000000e+00> : vector<64xf32>
    %10 = vector.multi_reduction <add>, %9, %cst_5 [0] : vector<8x64xf32> to vector<64xf32>
    %11 = vector.shape_cast %10 : vector<64xf32> to vector<1x64xf32>
    %cst_6 = arith.constant 1.250000e-01 : f32
    %12 = vector.broadcast %cst_6 : f32 to vector<1x64xf32>
    %13 = arith.mulf %11, %12 : vector<1x64xf32>
    %cst_7 = arith.constant 9.99999974E-6 : f32
    %14 = vector.broadcast %cst_7 : f32 to vector<1x64xf32>
    %15 = arith.addf %13, %14 : vector<1x64xf32>
    %16 = math.rsqrt %15 : vector<1x64xf32>
    %c0_8 = arith.constant 0 : index
    %c0_9 = arith.constant 0 : index
    %17 = vector.load %arg3[%c0_8, %c0_9] : memref<2x64xf32, #tpu.memory_space<vmem>>, vector<1x64xf32>
    %c1 = arith.constant 1 : index
    %c0_10 = arith.constant 0 : index
    %18 = vector.load %arg3[%c1, %c0_10] : memref<2x64xf32, #tpu.memory_space<vmem>>, vector<1x64xf32>
    %19 = arith.mulf %17, %16 : vector<1x64xf32>
    %20 = vector.broadcast %19 : vector<1x64xf32> to vector<8x64xf32>
    %21 = arith.mulf %8, %20 : vector<8x64xf32>
    %22 = vector.broadcast %18 : vector<1x64xf32> to vector<8x64xf32>
    %23 = arith.addf %21, %22 : vector<8x64xf32>
    %cst_11 = arith.constant 0.000000e+00 : f32
    %24 = vector.broadcast %cst_11 : f32 to vector<8x64xf32>
    %25 = arith.maximumf %23, %24 : vector<8x64xf32>
    %c0_12 = arith.constant 0 : index
    %c0_13 = arith.constant 0 : index
    %26 = vector.load %arg4[%c0_12, %c0_13] : memref<8x64xf32, #tpu.memory_space<vmem>>, vector<8x64xf32>
    tpu.vector_store %arg4[%c0_12, %c0_13], %25 {strides = array<i32>} : memref<8x64xf32, #tpu.memory_space<vmem>>, vector<8x64xf32>,
    return
  }
  func.func @transform_0(%arg0: i32) -> (i32, i32) {
    %c0_i32 = arith.constant 0 : i32
    %c0_i32_0 = arith.constant 0 : i32
    %c0_i32_1 = arith.constant 0 : i32
    return %c0_i32, %c0_i32_0 : i32, i32
  }
  func.func @transform_1(%arg0: i32) -> (i32, i32) {
    %c0_i32 = arith.constant 0 : i32
    %c0_i32_0 = arith.constant 0 : i32
    return %c0_i32, %arg0 : i32, i32
  }
  func.func @transform_2(%arg0: i32) -> (i32, i32) {
    %c0_i32 = arith.constant 0 : i32
    %c0_i32_0 = arith.constant 0 : i32
    return %c0_i32, %arg0 : i32, i32
  }
  func.func @transform_3(%arg0: i32) -> (i32, i32) {
    %c0_i32 = arith.constant 0 : i32
    %c0_i32_0 = arith.constant 0 : i32
    return %c0_i32, %arg0 : i32, i32
  }
}

module attributes {stable_mosaic.version = 11 : i64} {
  func.func @_linear_bn_relu_kernel(%arg0: i32, %arg1: memref<8x32xf32, #tpu.memory_space<vmem>>, %arg2: memref<32x64xf32, #tpu.memory_space<vmem>>, %arg3: memref<2x64xf32, #tpu.memory_space<vmem>>, %arg4: memref<8x64xf32, #tpu.memory_space<vmem>>) attributes {dimension_semantics = [#tpu.dimension_semantics<parallel>], iteration_bounds = array<i64: 1>, scalar_prefetch = 0 : i64, scratch_operands = 0 : i64, tpu.core_type = #tpu.core_type<tc>, window_params = [{pipeline_mode = #tpu.pipeline_mode<synchronous>, transform_indices = @transform_0, window_bounds = array<i64: 8, 32>}, {transform_indices = @transform_1, window_bounds = array<i64: 32, 64>}, {transform_indices = @transform_2, window_bounds = array<i64: 2, 64>}, {transform_indices = @transform_3, window_bounds = array<i64: 8, 64>}]} {
    %c0 = arith.constant 0 : index
    %c0_0 = arith.constant 0 : index
    %0 = vector.load %arg1[%c0, %c0_0] : memref<8x32xf32, #tpu.memory_space<vmem>>, vector<8x32xf32>
    %c0_1 = arith.constant 0 : index
    %c0_2 = arith.constant 0 : index
    %1 = vector.load %arg2[%c0_1, %c0_2] : memref<32x64xf32, #tpu.memory_space<vmem>>, vector<32x64xf32>
    %cst = arith.constant dense<0.000000e+00> : vector<8x64xf32>
    %2 = tpu.matmul %0, %1, %cst {dimension_numbers = #tpu.dot_dimension_numbers<[1], [0], [0], [1], [0, 0, 1, 1], [], []>} : vector<8x32xf32>, vector<32x64xf32>, vector<8x64xf32> -> vector<8x64xf32>
    %cst_3 = arith.constant dense<0.000000e+00> : vector<64xf32>
    %3 = vector.multi_reduction <add>, %2, %cst_3 [0] : vector<8x64xf32> to vector<64xf32>
    %4 = vector.shape_cast %3 : vector<64xf32> to vector<1x64xf32>
    %cst_4 = arith.constant 1.250000e-01 : f32
    %5 = vector.broadcast %cst_4 : f32 to vector<1x64xf32>
    %6 = arith.mulf %4, %5 : vector<1x64xf32>
    %7 = vector.broadcast %6 : vector<1x64xf32> to vector<8x64xf32>
    %8 = arith.subf %2, %7 : vector<8x64xf32>
    %9 = arith.mulf %8, %8 : vector<8x64xf32>
    %cst_5 = arith.constant dense<0.000000e+00> : vector<64xf32>
    %10 = vector.multi_reduction <add>, %9, %cst_5 [0] : vector<8x64xf32> to vector<64xf32>
    %11 = vector.shape_cast %10 : vector<64xf32> to vector<1x64xf32>
    %cst_6 = arith.constant 1.250000e-01 : f32
    %12 = vector.broadcast %cst_6 : f32 to vector<1x64xf32>
    %13 = arith.mulf %11, %12 : vector<1x64xf32>
    %cst_7 = arith.constant 9.99999974E-6 : f32
    %14 = vector.broadcast %cst_7 : f32 to vector<1x64xf32>
    %15 = arith.addf %13, %14 : vector<1x64xf32>
    %16 = math.rsqrt %15 : vector<1x64xf32>
    %c0_8 = arith.constant 0 : index
    %c0_9 = arith.constant 0 : index
    %17 = vector.load %arg3[%c0_8, %c0_9] : memref<2x64xf32, #tpu.memory_space<vmem>>, vector<1x64xf32>
    %c1 = arith.constant 1 : index
    %c0_10 = arith.constant 0 : index
    %18 = vector.load %arg3[%c1, %c0_10] : memref<2x64xf32, #tpu.memory_space<vmem>>, vector<1x64xf32>
    %19 = arith.mulf %17, %16 : vector<1x64xf32>
    %20 = vector.broadcast %19 : vector<1x64xf32> to vector<8x64xf32>
    %21 = arith.mulf %8, %20 : vector<8x64xf32>
    %22 = vector.broadcast %18 : vector<1x64xf32> to vector<8x64xf32>
    %23 = arith.addf %21, %22 : vector<8x64xf32>
    %cst_11 = arith.constant 0.000000e+00 : f32
    %24 = vector.broadcast %cst_11 : f32 to vector<8x64xf32>
    %25 = arith.maximumf %23, %24 : vector<8x64xf32>
    %c0_12 = arith.constant 0 : index
    %c0_13 = arith.constant 0 : index
    %26 = vector.load %arg4[%c0_12, %c0_13] : memref<8x64xf32, #tpu.memory_space<vmem>>, vector<8x64xf32>
    tpu.vector_store %arg4[%c0_12, %c0_13], %25 {strides = array<i32>} : memref<8x64xf32, #tpu.memory_space<vmem>>, vector<8x64xf32>,
    return
  }
  func.func @transform_0(%arg0: i32) -> (i32, i32) {
    %c0_i32 = arith.constant 0 : i32
    %c0_i32_0 = arith.constant 0 : i32
    %c0_i32_1 = arith.constant 0 : i32
    return %c0_i32, %c0_i32_0 : i32, i32
  }
  func.func @transform_1(%arg0: i32) -> (i32, i32) {
    %c0_i32 = arith.constant 0 : i32
    %c0_i32_0 = arith.constant 0 : i32
    return %c0_i32, %arg0 : i32, i32
  }
  func.func @transform_2(%arg0: i32) -> (i32, i32) {
    %c0_i32 = arith.constant 0 : i32
    %c0_i32_0 = arith.constant 0 : i32
    return %c0_i32, %arg0 : i32, i32
  }
  func.func @transform_3(%arg0: i32) -> (i32, i32) {
    %c0_i32 = arith.constant 0 : i32
    %c0_i32_0 = arith.constant 0 : i32
    return %c0_i32, %arg0 : i32, i32
  }
}

</mosaic_0001>

<bundles_post_ra>
// kernel: tpu_custom_call.1
= control target key start
LH: loop header
LB: loop body
LE: loop exit
PB: predicated region body
PF: predicated region fallthrough
CT: control target
= control target key end

     0   :  { %8 = vsyncpa [#allocation3], 0  ;;  %s358_s0 = inlined_call_operand.hbm [shape: f32[8,32], index: 0, kind: input, shape index: {}]   ;;  %s359_s1 = inlined_call_operand.hbm [shape: f32[32,64], index: 1, kind: input, shape index: {}]   ;;  %s360_s2 = inlined_call_operand.vmem [shape: f32[2,64], index: 2, kind: input, shape index: {}]   ;;  %s361_s3 = inlined_call_operand.hbm [shape: f32[8,64], index: 3, kind: output, shape index: {}]  }
   0x1   :  { %9 = vsyncpa [#allocation6], 0 }
   0x2   :  { %10 = vsyncpa [#allocation4], 0  ;;  %s278_s12 = smov [#allocation2]   ;;  %s279_s14 = smov [#allocation5]  }
   0x3   :  { %s17_s13 = sshll.u32 %s278_s12, 4  ;;  %s26_s15 = sshll.u32 %s279_s14, 4  ;;  %s18_s13 = int_to_ptr.vmem [resolvable:$true] %s17_s13  ;;  %s306_s15 = int_to_ptr.vmem [resolvable:$true] %s26_s15 }
   0x4   :  { %s206_s18 = scalar_lea.hbm %s358_s0, 128 }
   0x5   :  { %p207_p0 = scmp.ne.s32.totalorder %s358_s0, %s206_s18  ;;  %p210_p1 = scmp.lt.u32.totalorder %s206_s18, %s358_s0 }
   0x7   :  { %p212_p2 = pnand %p210_p1, %p207_p0 }
   0x9   :  { %215 = shalt.err (!%p212_p2)
}
   0xa   :  { %s216_s23 = scalar_lea.vmem %s18_s13, 128  ;;  %p221_p4 = scmp.lt.s32.totalorder %s18_s13, %s18_s13 }
   0xb   :  { %p217_p3 = scmp.ne.s32.totalorder %s18_s13, %s216_s23  ;;  %p222_p5 = scmp.lt.s32.totalorder %s216_s23, %s216_s23 }
   0xd   :  { %p223_p6 = por %p222_p5, %p221_p4 }
   0xf   :  { %p224_p7 = pnand %p223_p6, %p217_p3 }
  0x11   :  { %227 = shalt.err (!%p224_p7)
}
  0x12   :  { %20 = dma.hbm_to_vmem [thread:$0]  %s358_s0, 128, %s18_s13, [#allocation3]  }
  0x13   :  { %s228_s28 = scalar_lea.hbm %s359_s1, 512 }
  0x14   :  { %p229_p8 = scmp.ne.s32.totalorder %s359_s1, %s228_s28  ;;  %p232_p9 = scmp.lt.u32.totalorder %s228_s28, %s359_s1 }
  0x16   :  { %p234_p10 = pnand %p232_p9, %p229_p8 }
  0x18   :  { %237 = shalt.err (!%p234_p10)
}
  0x19   :  { %s238_s6 = scalar_lea.vmem %s306_s15, 512  ;;  %p243_p12 = scmp.lt.s32.totalorder %s306_s15, %s306_s15 }
  0x1a   :  { %p239_p11 = scmp.ne.s32.totalorder %s306_s15, %s238_s6  ;;  %p244_p13 = scmp.lt.s32.totalorder %s238_s6, %s238_s6 }
  0x1c   :  { %p245_p0 = por %p244_p13, %p243_p12 }
  0x1e   :  { %p246_p1 = pnand %p245_p0, %p239_p11 }
  0x20   :  { %249 = shalt.err (!%p246_p1)
}
  0x21   :  { %s280_s0 = smov 128   ;;  %s281_s7 = smov 8  }
  0x22   :  { %32 = dma.hbm_to_vmem [thread:$0]  %s359_s1, 512, %s306_s15, [#allocation6], %s280_s0, %s280_s0, %s281_s7  }
  0x23   :  { %272 = dma.done.wait [#allocation3], 128  }
  0x24   :  { %273 = vsyncadd [#allocation3], 4294967168 }
  0x25   :  { %274 = dma.done.wait [#allocation6], 512  }
  0x26   :  { %275 = vsyncadd [#allocation6], 4294966784  ;;  %v282_v0 = vmov 0.0|0.0   ;;  %vm283_vm0 = vmmov 0   ;;  %v284_v1 = vmov 0.0   ;;  %v42_v2 = vld [vmem:[#allocation5] sm:$0xff]  ;;  %v144_v30 = vlaneseq }
  0x27   :  { %190 = vmatprep.subr.bf16.mxu0 %v282_v0  ;;  %187 = vmatprep.mubr.msk.f32.mxu0 %vm283_vm0, %v284_v1  ;;  %v43_v3 = vld [vmem:[#allocation5 + $0x8] sm:$0xff]  ;;  %v44_v4 = vld [vmem:[#allocation5 + $0x10] sm:$0xff]  ;;  %v45_v6 = vld [vmem:[#allocation5 + $0x18] sm:$0xff]  ;;  %vm46_vm1 = vcmask 261120   ;;  %vm120_vm2 = vcmask 523264   ;;  %s285_s13 = smov [#allocation7]  }
  0x28   :  { %v191_v5 = vpack.c.bf16 %v43_v3, %v42_v2  ;;  %v194_v7 = vpack.c.bf16 %v45_v6, %v44_v4  ;;  %v41_v8 = vld [vmem:[#allocation2] sm:$0xff]  ;;  %v145_v31 = vshrl.u32 %v144_v30, 7  ;;  %s162_s14 = sshll.u32 %s285_s13, 4  ;;  %s163_s14 = int_to_ptr.vmem [resolvable:$true] %s162_s14 }
  0x29   :  { %v141_v32 = vld [vmem:[%s360_s2] sm:$0x1]  ;;  %v173_v37 = vld [vmem:[%s360_s2 + $0x1] ss:$0 sm:$0xff]  ;;  %s250_s15 = scalar_lea.vmem %s163_s14, 128  ;;  %p255_p3 = scmp.lt.s32.totalorder %s163_s14, %s163_s14 }
  0x2a   :  { %192 = vmatpush3.bf16.msra.mxu0 %v191_v5  ;;  %v146_v33 = vsub.s32 0, %v145_v31  ;;  %p251_p2 = scmp.ne.s32.totalorder %s163_s14, %s250_s15  ;;  %p256_p4 = scmp.lt.s32.totalorder %s250_s15, %s250_s15 }
  0x2b   :  { %193 = vmatprep.subr.bf16.mxu0 %v282_v0 }
  0x2c   :  { %p257_p5 = por %p256_p4, %p255_p3 }
  0x2e   :  { %195 = vmatpush3.bf16.msra.mxu0 %v194_v7  ;;  %p258_p6 = pnand %p257_p5, %p251_p2 }
  0x31   :  { %188 = vmatmul.mubr.msk.f32.vlgmr.msra.gmra.mrb[0].mxu0 %vm46_vm1, %v41_v8 }
 0x104   :  { %v116_v9 = vpop.f32.mrb[0].mxu0 }
 0x105   :  { %v121_v10 = vsel %vm120_vm2, %v116_v9, 0.0  ;;  %v189_v11 = vpop.f32.mrb[1].mxu0 }
 0x106   :  { %v122_v12 = vrot.slane %v121_v10, 4 }
 0x108   :  { %v123_v13 = vadd.f32 %v122_v12, %v121_v10 }
 0x10a   :  { %v124_v14 = vrot.slane %v123_v13, 2 }
 0x10c   :  { %v125_v15 = vadd.f32 %v124_v14, %v123_v13 }
 0x10e   :  { %v126_v16 = vrot.slane %v125_v15, 1 }
 0x110   :  { %v127_v17 = vadd.f32 %v126_v16, %v125_v15 }
 0x112   :  { %v128_v18 = vmul.f32 0.125, %v127_v17 }
 0x114   :  { %v129_v19 = vsub.f32 %v116_v9, %v128_v18 }
 0x116   :  { %v130_v20 = vmul.f32 %v129_v19, %v129_v19 }
 0x118   :  { %v131_v21 = vsel %vm120_vm2, %v130_v20, 0.0 }
 0x119   :  { %v132_v22 = vrot.slane %v131_v21, 4 }
 0x11b   :  { %v133_v23 = vadd.f32 %v132_v22, %v131_v21 }
 0x11d   :  { %v134_v24 = vrot.slane %v133_v23, 2 }
 0x11f   :  { %v135_v25 = vadd.f32 %v134_v24, %v133_v23 }
 0x121   :  { %v136_v26 = vrot.slane %v135_v25, 1 }
 0x123   :  { %v137_v27 = vadd.f32 %v136_v26, %v135_v25 }
 0x125   :  { %v138_v28 = vmul.f32 0.125, %v137_v27 }
 0x127   :  { %v139_v29 = vadd.f32 1e-05, %v138_v28 }
 0x129   :  { %204 = vrsqrt.f32 %v139_v29 }
 0x133   :  { %v205_v34 = vpop.eup %204 }
 0x134   :  { %v143_v35 = vmul.f32 %v205_v34, %v141_v32 }
 0x136   :  { %v147_v36 = vrot.slane %v143_v35, %v146_v33 }
 0x138   :  { %v148_v38 = vmul.f32 %v147_v36, %v129_v19 }
 0x13a   :  { %v153_v39 = vadd.f32 %v173_v37, %v148_v38 }
 0x13c   :  { %v154_v40 = vmax.f32 %v153_v39, 0.0 }
 0x13e   :  { %155 = vst.msk [vmem:[#allocation7] sm:$0xff] %vm120_vm2, %v154_v40 }
 0x13f   :  { %261 = shalt.err (!%p258_p6)
}
 0x140   :  { %s262_s18 = scalar_lea.hbm %s361_s3, 128 }
 0x141   :  { %p263_p7 = scmp.ne.s32.totalorder %s361_s3, %s262_s18  ;;  %p266_p8 = scmp.lt.u32.totalorder %s262_s18, %s361_s3 }
 0x143   :  { %p268_p9 = pnand %p266_p8, %p263_p7 }
 0x145   :  { %271 = shalt.err (!%p268_p9)
}
 0x146   :  { %165 = dma.vmem_to_hbm [thread:$0]  %s163_s14, 128, %s361_s3, [#allocation4]  }
 0x147   :  { %276 = dma.done.wait [#allocation4], 128  }
 0x148   :  { %277 = vsyncadd [#allocation4], 4294967168 }
 0x149   :  { %169 = vsyncpa [#allocation3], 1 }
 0x14a   :  { %170 = vsyncpa [#allocation6], 1 }
 0x14b   :  { %171 = vsyncpa [#allocation4], 1 }

// kernel: tpu_custom_call.1
= control target key start
LH: loop header
LB: loop body
LE: loop exit
PB: predicated region body
PF: predicated region fallthrough
CT: control target
= control target key end

     0   :  { %8 = vsyncpa [#allocation3], 0  ;;  %s358_s0 = inlined_call_operand.hbm [shape: f32[8,32], index: 0, kind: input, shape index: {}]   ;;  %s359_s1 = inlined_call_operand.hbm [shape: f32[32,64], index: 1, kind: input, shape index: {}]   ;;  %s360_s2 = inlined_call_operand.vmem [shape: f32[2,64], index: 2, kind: input, shape index: {}]   ;;  %s361_s3 = inlined_call_operand.hbm [shape: f32[8,64], index: 3, kind: output, shape index: {}]  }
   0x1   :  { %9 = vsyncpa [#allocation6], 0 }
   0x2   :  { %10 = vsyncpa [#allocation4], 0  ;;  %s278_s12 = smov [#allocation2]   ;;  %s279_s14 = smov [#allocation5]  }
   0x3   :  { %s17_s13 = sshll.u32 %s278_s12, 4  ;;  %s26_s15 = sshll.u32 %s279_s14, 4  ;;  %s18_s13 = int_to_ptr.vmem [resolvable:$true] %s17_s13  ;;  %s306_s15 = int_to_ptr.vmem [resolvable:$true] %s26_s15 }
   0x4   :  { %s206_s18 = scalar_lea.hbm %s358_s0, 128 }
   0x5   :  { %p207_p0 = scmp.ne.s32.totalorder %s358_s0, %s206_s18  ;;  %p210_p1 = scmp.lt.u32.totalorder %s206_s18, %s358_s0 }
   0x7   :  { %p212_p2 = pnand %p210_p1, %p207_p0 }
   0x9   :  { %215 = shalt.err (!%p212_p2)
}
   0xa   :  { %s216_s23 = scalar_lea.vmem %s18_s13, 128  ;;  %p221_p4 = scmp.lt.s32.totalorder %s18_s13, %s18_s13 }
   0xb   :  { %p217_p3 = scmp.ne.s32.totalorder %s18_s13, %s216_s23  ;;  %p222_p5 = scmp.lt.s32.totalorder %s216_s23, %s216_s23 }
   0xd   :  { %p223_p6 = por %p222_p5, %p221_p4 }
   0xf   :  { %p224_p7 = pnand %p223_p6, %p217_p3 }
  0x11   :  { %227 = shalt.err (!%p224_p7)
}
  0x12   :  { %20 = dma.hbm_to_vmem [thread:$0]  %s358_s0, 128, %s18_s13, [#allocation3]  }
  0x13   :  { %s228_s28 = scalar_lea.hbm %s359_s1, 512 }
  0x14   :  { %p229_p8 = scmp.ne.s32.totalorder %s359_s1, %s228_s28  ;;  %p232_p9 = scmp.lt.u32.totalorder %s228_s28, %s359_s1 }
  0x16   :  { %p234_p10 = pnand %p232_p9, %p229_p8 }
  0x18   :  { %237 = shalt.err (!%p234_p10)
}
  0x19   :  { %s238_s6 = scalar_lea.vmem %s306_s15, 512  ;;  %p243_p12 = scmp.lt.s32.totalorder %s306_s15, %s306_s15 }
  0x1a   :  { %p239_p11 = scmp.ne.s32.totalorder %s306_s15, %s238_s6  ;;  %p244_p13 = scmp.lt.s32.totalorder %s238_s6, %s238_s6 }
  0x1c   :  { %p245_p0 = por %p244_p13, %p243_p12 }
  0x1e   :  { %p246_p1 = pnand %p245_p0, %p239_p11 }
  0x20   :  { %249 = shalt.err (!%p246_p1)
}
  0x21   :  { %s280_s0 = smov 128   ;;  %s281_s7 = smov 8  }
  0x22   :  { %32 = dma.hbm_to_vmem [thread:$0]  %s359_s1, 512, %s306_s15, [#allocation6], %s280_s0, %s280_s0, %s281_s7  }
  0x23   :  { %272 = dma.done.wait [#allocation3], 128  }
  0x24   :  { %273 = vsyncadd [#allocation3], 4294967168 }
  0x25   :  { %274 = dma.done.wait [#allocation6], 512  }
  0x26   :  { %275 = vsyncadd [#allocation6], 4294966784  ;;  %v282_v0 = vmov 0.0|0.0   ;;  %vm283_vm0 = vmmov 0   ;;  %v284_v1 = vmov 0.0   ;;  %v42_v2 = vld [vmem:[#allocation5] sm:$0xff]  ;;  %v144_v30 = vlaneseq }
  0x27   :  { %190 = vmatprep.subr.bf16.mxu0 %v282_v0  ;;  %187 = vmatprep.mubr.msk.f32.mxu0 %vm283_vm0, %v284_v1  ;;  %v43_v3 = vld [vmem:[#allocation5 + $0x8] sm:$0xff]  ;;  %v44_v4 = vld [vmem:[#allocation5 + $0x10] sm:$0xff]  ;;  %v45_v6 = vld [vmem:[#allocation5 + $0x18] sm:$0xff]  ;;  %vm46_vm1 = vcmask 261120   ;;  %vm120_vm2 = vcmask 523264   ;;  %s285_s13 = smov [#allocation7]  }
  0x28   :  { %v191_v5 = vpack.c.bf16 %v43_v3, %v42_v2  ;;  %v194_v7 = vpack.c.bf16 %v45_v6, %v44_v4  ;;  %v41_v8 = vld [vmem:[#allocation2] sm:$0xff]  ;;  %v145_v31 = vshrl.u32 %v144_v30, 7  ;;  %s162_s14 = sshll.u32 %s285_s13, 4  ;;  %s163_s14 = int_to_ptr.vmem [resolvable:$true] %s162_s14 }
  0x29   :  { %v141_v32 = vld [vmem:[%s360_s2] sm:$0x1]  ;;  %v173_v37 = vld [vmem:[%s360_s2 + $0x1] ss:$0 sm:$0xff]  ;;  %s250_s15 = scalar_lea.vmem %s163_s14, 128  ;;  %p255_p3 = scmp.lt.s32.totalorder %s163_s14, %s163_s14 }
  0x2a   :  { %192 = vmatpush3.bf16.msra.mxu0 %v191_v5  ;;  %v146_v33 = vsub.s32 0, %v145_v31  ;;  %p251_p2 = scmp.ne.s32.totalorder %s163_s14, %s250_s15  ;;  %p256_p4 = scmp.lt.s32.totalorder %s250_s15, %s250_s15 }
  0x2b   :  { %193 = vmatprep.subr.bf16.mxu0 %v282_v0 }
  0x2c   :  { %p257_p5 = por %p256_p4, %p255_p3 }
  0x2e   :  { %195 = vmatpush3.bf16.msra.mxu0 %v194_v7  ;;  %p258_p6 = pnand %p257_p5, %p251_p2 }
  0x31   :  { %188 = vmatmul.mubr.msk.f32.vlgmr.msra.gmra.mrb[0].mxu0 %vm46_vm1, %v41_v8 }
 0x104   :  { %v116_v9 = vpop.f32.mrb[0].mxu0 }
 0x105   :  { %v121_v10 = vsel %vm120_vm2, %v116_v9, 0.0  ;;  %v189_v11 = vpop.f32.mrb[1].mxu0 }
 0x106   :  { %v122_v12 = vrot.slane %v121_v10, 4 }
 0x108   :  { %v123_v13 = vadd.f32 %v122_v12, %v121_v10 }
 0x10a   :  { %v124_v14 = vrot.slane %v123_v13, 2 }
 0x10c   :  { %v125_v15 = vadd.f32 %v124_v14, %v123_v13 }
 0x10e   :  { %v126_v16 = vrot.slane %v125_v15, 1 }
 0x110   :  { %v127_v17 = vadd.f32 %v126_v16, %v125_v15 }
 0x112   :  { %v128_v18 = vmul.f32 0.125, %v127_v17 }
 0x114   :  { %v129_v19 = vsub.f32 %v116_v9, %v128_v18 }
 0x116   :  { %v130_v20 = vmul.f32 %v129_v19, %v129_v19 }
 0x118   :  { %v131_v21 = vsel %vm120_vm2, %v130_v20, 0.0 }
 0x119   :  { %v132_v22 = vrot.slane %v131_v21, 4 }
 0x11b   :  { %v133_v23 = vadd.f32 %v132_v22, %v131_v21 }
 0x11d   :  { %v134_v24 = vrot.slane %v133_v23, 2 }
 0x11f   :  { %v135_v25 = vadd.f32 %v134_v24, %v133_v23 }
 0x121   :  { %v136_v26 = vrot.slane %v135_v25, 1 }
 0x123   :  { %v137_v27 = vadd.f32 %v136_v26, %v135_v25 }
 0x125   :  { %v138_v28 = vmul.f32 0.125, %v137_v27 }
 0x127   :  { %v139_v29 = vadd.f32 1e-05, %v138_v28 }
 0x129   :  { %204 = vrsqrt.f32 %v139_v29 }
 0x133   :  { %v205_v34 = vpop.eup %204 }
 0x134   :  { %v143_v35 = vmul.f32 %v205_v34, %v141_v32 }
 0x136   :  { %v147_v36 = vrot.slane %v143_v35, %v146_v33 }
 0x138   :  { %v148_v38 = vmul.f32 %v147_v36, %v129_v19 }
 0x13a   :  { %v153_v39 = vadd.f32 %v173_v37, %v148_v38 }
 0x13c   :  { %v154_v40 = vmax.f32 %v153_v39, 0.0 }
 0x13e   :  { %155 = vst.msk [vmem:[#allocation7] sm:$0xff] %vm120_vm2, %v154_v40 }
 0x13f   :  { %261 = shalt.err (!%p258_p6)
}
 0x140   :  { %s262_s18 = scalar_lea.hbm %s361_s3, 128 }
 0x141   :  { %p263_p7 = scmp.ne.s32.totalorder %s361_s3, %s262_s18  ;;  %p266_p8 = scmp.lt.u32.totalorder %s262_s18, %s361_s3 }
 0x143   :  { %p268_p9 = pnand %p266_p8, %p263_p7 }
 0x145   :  { %271 = shalt.err (!%p268_p9)
}
 0x146   :  { %165 = dma.vmem_to_hbm [thread:$0]  %s163_s14, 128, %s361_s3, [#allocation4]  }
 0x147   :  { %276 = dma.done.wait [#allocation4], 128  }
 0x148   :  { %277 = vsyncadd [#allocation4], 4294967168 }
 0x149   :  { %169 = vsyncpa [#allocation3], 1 }
 0x14a   :  { %170 = vsyncpa [#allocation6], 1 }
 0x14b   :  { %171 = vsyncpa [#allocation4], 1 }

</bundles_post_ra>
